<compile_context>
chip_gen: v7x
topology: tpu7x:2x2x1
jax: 0.10.0
libtpu: 0.0.40
codegen_flags: <defaults>
</compile_context>

<pallas_src>
import jax
import jax.numpy as jnp
import numpy as np
from jax.experimental import pallas as pl
from jax.experimental.pallas import tpu as pltpu


def _graph_layer(x_bf, adj_bf, ws, wn, bias):
    """relu(x @ Ws + (adj_scaled @ x) @ Wn + b)  ==  relu(Linear(cat([x, adj@x/deg])))."""
    din = x_bf.shape[-1]
    h = ws.shape[-1]
    if h < din:
        # Cheaper N^2 term: adj @ (x @ Wn)   -> N*N*h inner work
        xw = jnp.dot(x_bf, wn, preferred_element_type=jnp.float32).astype(jnp.bfloat16)
        neigh_term = jnp.dot(adj_bf, xw, preferred_element_type=jnp.float32)
    else:
        # Cheaper N^2 term: (adj @ x) @ Wn   -> N*N*din inner work
        neigh = jnp.dot(adj_bf, x_bf, preferred_element_type=jnp.float32).astype(jnp.bfloat16)
        neigh_term = jnp.dot(neigh, wn, preferred_element_type=jnp.float32)
    self_term = jnp.dot(x_bf, ws, preferred_element_type=jnp.float32)
    return jnp.maximum(self_term + neigh_term + bias, 0.0)  # f32 (N, H)


def _make_encoder_kernel(concat):
    def kernel(x_ref, adj_ref, ws1_ref, wn1_ref, b1_ref, ws2_ref, wn2_ref, b2_ref, o_ref):
        x = x_ref[...]                       # (N, Din) f32, batch dim squeezed away
        adj = adj_ref[...]                   # (N, N) bf16, rows pre-scaled by 1/(deg+eps)
        x_bf = x.astype(jnp.bfloat16)

        f1 = _graph_layer(x_bf, adj, ws1_ref[...], wn1_ref[...], b1_ref[...])     # (N, H)
        f2 = _graph_layer(f1.astype(jnp.bfloat16), adj,
                          ws2_ref[...], wn2_ref[...], b2_ref[...])                # (N, H)

        if concat:
            h = f2.shape[-1]
            o_ref[:, :h] = f2
            o_ref[:, h:] = x                 # exact f32 copy of the layer-0 input
        else:
            o_ref[...] = f2
    return kernel


def conv_graph_encoder(x, adj, num_neighbors, params, concat=True):
    """ConvGraphEncoder.forward.

    x: (B, N, Din) f32; adj: (N, N); num_neighbors: (N,);
    params: {"w1": (H, 2*Din), "b1": (H,), "w2": (H, 2*H), "b2": (H,)}  (PyTorch layout).
    Returns (B, N, H+Din) if concat else (B, N, H).
    """
    B, N, Din = x.shape
    H = params["w1"].shape[0]
    out_dim = H + Din if concat else H

    # Fold the neighbor normalization into the adjacency (done once, outside the kernel).
    adj_scaled = (adj.astype(jnp.float32)
                  / (num_neighbors.astype(jnp.float32)[:, None] + 1e-7)).astype(jnp.bfloat16)

    def split_w(w, din):
        w_t = w.astype(jnp.float32).T                    # (2*din, H)
        return w_t[:din].astype(jnp.bfloat16), w_t[din:].astype(jnp.bfloat16)

    ws1, wn1 = split_w(params["w1"], Din)                # (Din, H) each
    ws2, wn2 = split_w(params["w2"], H)                  # (H, H) each
    b1 = params["b1"].reshape(1, H).astype(jnp.float32)
    b2 = params["b2"].reshape(1, H).astype(jnp.float32)

    # Rough VMEM budget (double-buffered blocks + headroom for intermediates).
    vmem_est = 2 * (adj_scaled.size * 2 + N * Din * 4 + N * out_dim * 4
                    + (ws1.size + wn1.size + ws2.size + wn2.size) * 2
                    + (b1.size + b2.size) * 4) + (8 << 20)
    vmem_limit = int(min(128 << 20, max(32 << 20, vmem_est)))

    const = lambda i: (0, 0)   # grid-invariant blocks: fetched once, not re-DMA'd per step
    return pl.pallas_call(
        _make_encoder_kernel(concat),
        out_shape=jax.ShapeDtypeStruct((B, N, out_dim), jnp.float32),
        grid=(B,),
        in_specs=[
            pl.BlockSpec((None, N, Din), lambda i: (i, 0, 0)),   # per-batch x slice
            pl.BlockSpec((N, N), const),                         # pre-scaled adjacency
            pl.BlockSpec((Din, H), const),                       # gc1 W_self
            pl.BlockSpec((Din, H), const),                       # gc1 W_neigh
            pl.BlockSpec((1, H), const),                         # gc1 bias
            pl.BlockSpec((H, H), const),                         # gc2 W_self
            pl.BlockSpec((H, H), const),                         # gc2 W_neigh
            pl.BlockSpec((1, H), const),                         # gc2 bias
        ],
        out_specs=pl.BlockSpec((None, N, out_dim), lambda i: (i, 0, 0)),
        compiler_params=pltpu.CompilerParams(
            dimension_semantics=("parallel",),
            vmem_limit_bytes=vmem_limit,
        ),
    )(x.astype(jnp.float32), adj_scaled, ws1, wn1, b1, ws2, wn2, b2)


def _init_linear(key, out_features, in_features):
    # Mimic PyTorch nn.Linear default init: U(-1/sqrt(fan_in), 1/sqrt(fan_in)).
    kw, kb = jax.random.split(key)
    bound = 1.0 / np.sqrt(in_features)
    w = jax.random.uniform(kw, (out_features, in_features), jnp.float32, -bound, bound)
    b = jax.random.uniform(kb, (out_features,), jnp.float32, -bound, bound)
    return w, b


def _reference(x, adj, num_neighbors, params, concat=True):
    # Pure-JAX f32 reference replicating the PyTorch math (dense equivalent of spmm path).
    def layer(x, w, b):
        neigh = jnp.einsum("ij,bjd->bid", adj, x)
        neigh = neigh / (num_neighbors.reshape(1, -1, 1) + 1e-7)
        cat = jnp.concatenate([x, neigh], axis=-1)
        return jax.nn.relu(cat @ w.T + b)
    f = layer(x, params["w1"], params["b1"])
    f = layer(f, params["w2"], params["b2"])
    return jnp.concatenate([f, x], axis=-1) if concat else f


if __name__ == "__main__":
    B, N, D, H = 2, 8, 16, 32
    key = jax.random.PRNGKey(0)
    kx, kadj, k1, k2 = jax.random.split(key, 4)

    x = jax.random.normal(kx, (B, N, D), jnp.float32)
    adj = (jax.random.uniform(kadj, (N, N)) > 0.5).astype(jnp.float32)
    num_neighbors = jnp.sum(adj, axis=1)                 # (N,)

    w1, b1 = _init_linear(k1, H, 2 * D)                  # gc1: Linear(2*D -> H)
    w2, b2 = _init_linear(k2, H, 2 * H)                  # gc2: Linear(2*H -> H)
    params = {"w1": w1, "b1": b1, "w2": w2, "b2": b2}

    # concat=True path (default forward)
    out = conv_graph_encoder(x, adj, num_neighbors, params, concat=True)
    out = jax.block_until_ready(out)
    ref = _reference(x, adj, num_neighbors, params, concat=True)
    assert out.shape == (B, N, H + D), out.shape
    # bf16 MXU inputs -> relaxed tolerance vs the f32 reference.
    np.testing.assert_allclose(np.asarray(out), np.asarray(ref), rtol=5e-2, atol=5e-2)

    # concat=False path
    out2 = conv_graph_encoder(x, adj, num_neighbors, params, concat=False)
    out2 = jax.block_until_ready(out2)
    ref2 = _reference(x, adj, num_neighbors, params, concat=False)
    assert out2.shape == (B, N, H), out2.shape
    np.testing.assert_allclose(np.asarray(out2), np.asarray(ref2), rtol=5e-2, atol=5e-2)

    print("KERNEL_OK")
</pallas_src>

<mosaic_0001>
module attributes {stable_mosaic.version = 11 : i64} {
  func.func @kernel(%arg0: i32, %arg1: memref<1x8x16xf32, #tpu.memory_space<vmem>>, %arg2: memref<8x8xbf16, #tpu.memory_space<vmem>>, %arg3: memref<16x32xbf16, #tpu.memory_space<vmem>>, %arg4: memref<16x32xbf16, #tpu.memory_space<vmem>>, %arg5: memref<1x32xf32, #tpu.memory_space<vmem>>, %arg6: memref<32x32xbf16, #tpu.memory_space<vmem>>, %arg7: memref<32x32xbf16, #tpu.memory_space<vmem>>, %arg8: memref<1x32xf32, #tpu.memory_space<vmem>>, %arg9: memref<1x8x48xf32, #tpu.memory_space<vmem>>) attributes {dimension_semantics = [#tpu.dimension_semantics<parallel>], iteration_bounds = array<i64: 2>, scalar_prefetch = 0 : i64, scratch_operands = 0 : i64, tpu.core_type = #tpu.core_type<tc>, window_params = [{transform_indices = @transform_0, window_bounds = array<i64: 1, 8, 16>}, {pipeline_mode = #tpu.pipeline_mode<synchronous>, transform_indices = @transform_1, window_bounds = array<i64: 8, 8>}, {pipeline_mode = #tpu.pipeline_mode<synchronous>, transform_indices = @transform_2, window_bounds = array<i64: 16, 32>}, {pipeline_mode = #tpu.pipeline_mode<synchronous>, transform_indices = @transform_3, window_bounds = array<i64: 16, 32>}, {pipeline_mode = #tpu.pipeline_mode<synchronous>, transform_indices = @transform_4, window_bounds = array<i64: 1, 32>}, {pipeline_mode = #tpu.pipeline_mode<synchronous>, transform_indices = @transform_5, window_bounds = array<i64: 32, 32>}, {pipeline_mode = #tpu.pipeline_mode<synchronous>, transform_indices = @transform_6, window_bounds = array<i64: 32, 32>}, {pipeline_mode = #tpu.pipeline_mode<synchronous>, transform_indices = @transform_7, window_bounds = array<i64: 1, 32>}, {transform_indices = @transform_8, window_bounds = array<i64: 1, 8, 48>}]} {
    %c0 = arith.constant 0 : index
    %c0_0 = arith.constant 0 : index
    %c0_1 = arith.constant 0 : index
    %0 = vector.load %arg1[%c0, %c0_0, %c0_1] : memref<1x8x16xf32, #tpu.memory_space<vmem>>, vector<1x8x16xf32>
    %1 = vector.shape_cast %0 : vector<1x8x16xf32> to vector<8x16xf32>
    %c0_2 = arith.constant 0 : index
    %c0_3 = arith.constant 0 : index
    %2 = vector.load %arg2[%c0_2, %c0_3] : memref<8x8xbf16, #tpu.memory_space<vmem>>, vector<8x8xbf16>
    %3 = arith.truncf %1 : vector<8x16xf32> to vector<8x16xbf16>
    %c0_4 = arith.constant 0 : index
    %c0_5 = arith.constant 0 : index
    %4 = vector.load %arg3[%c0_4, %c0_5] : memref<16x32xbf16, #tpu.memory_space<vmem>>, vector<16x32xbf16>
    %c0_6 = arith.constant 0 : index
    %c0_7 = arith.constant 0 : index
    %5 = vector.load %arg4[%c0_6, %c0_7] : memref<16x32xbf16, #tpu.memory_space<vmem>>, vector<16x32xbf16>
    %c0_8 = arith.constant 0 : index
    %c0_9 = arith.constant 0 : index
    %6 = vector.load %arg5[%c0_8, %c0_9] : memref<1x32xf32, #tpu.memory_space<vmem>>, vector<1x32xf32>
    %cst = arith.constant dense<0.000000e+00> : vector<8x16xf32>
    %7 = tpu.matmul %2, %3, %cst {dimension_numbers = #tpu.dot_dimension_numbers<[1], [0], [0], [1], [0, 0, 1, 1], [], []>} : vector<8x8xbf16>, vector<8x16xbf16>, vector<8x16xf32> -> vector<8x16xf32>
    %8 = arith.truncf %7 : vector<8x16xf32> to vector<8x16xbf16>
    %cst_10 = arith.constant dense<0.000000e+00> : vector<8x32xf32>
    %9 = tpu.matmul %8, %5, %cst_10 {dimension_numbers = #tpu.dot_dimension_numbers<[1], [0], [0], [1], [0, 0, 1, 1], [], []>} : vector<8x16xbf16>, vector<16x32xbf16>, vector<8x32xf32> -> vector<8x32xf32>
    %cst_11 = arith.constant dense<0.000000e+00> : vector<8x32xf32>
    %10 = tpu.matmul %3, %4, %cst_11 {dimension_numbers = #tpu.dot_dimension_numbers<[1], [0], [0], [1], [0, 0, 1, 1], [], []>} : vector<8x16xbf16>, vector<16x32xbf16>, vector<8x32xf32> -> vector<8x32xf32>
    %11 = arith.addf %10, %9 : vector<8x32xf32>
    %12 = vector.broadcast %6 : vector<1x32xf32> to vector<8x32xf32>
    %13 = arith.addf %11, %12 : vector<8x32xf32>
    %cst_12 = arith.constant 0.000000e+00 : f32
    %14 = vector.broadcast %cst_12 : f32 to vector<8x32xf32>
    %15 = arith.maximumf %13, %14 : vector<8x32xf32>
    %16 = arith.truncf %15 : vector<8x32xf32> to vector<8x32xbf16>
    %c0_13 = arith.constant 0 : index
    %c0_14 = arith.constant 0 : index
    %17 = vector.load %arg6[%c0_13, %c0_14] : memref<32x32xbf16, #tpu.memory_space<vmem>>, vector<32x32xbf16>
    %c0_15 = arith.constant 0 : index
    %c0_16 = arith.constant 0 : index
    %18 = vector.load %arg7[%c0_15, %c0_16] : memref<32x32xbf16, #tpu.memory_space<vmem>>, vector<32x32xbf16>
    %c0_17 = arith.constant 0 : index
    %c0_18 = arith.constant 0 : index
    %19 = vector.load %arg8[%c0_17, %c0_18] : memref<1x32xf32, #tpu.memory_space<vmem>>, vector<1x32xf32>
    %cst_19 = arith.constant dense<0.000000e+00> : vector<8x32xf32>
    %20 = tpu.matmul %2, %16, %cst_19 {dimension_numbers = #tpu.dot_dimension_numbers<[1], [0], [0], [1], [0, 0, 1, 1], [], []>} : vector<8x8xbf16>, vector<8x32xbf16>, vector<8x32xf32> -> vector<8x32xf32>
    %21 = arith.truncf %20 : vector<8x32xf32> to vector<8x32xbf16>
    %cst_20 = arith.constant dense<0.000000e+00> : vector<8x32xf32>
    %22 = tpu.matmul %21, %18, %cst_20 {dimension_numbers = #tpu.dot_dimension_numbers<[1], [0], [0], [1], [0, 0, 1, 1], [], []>} : vector<8x32xbf16>, vector<32x32xbf16>, vector<8x32xf32> -> vector<8x32xf32>
    %cst_21 = arith.constant dense<0.000000e+00> : vector<8x32xf32>
    %23 = tpu.matmul %16, %17, %cst_21 {dimension_numbers = #tpu.dot_dimension_numbers<[1], [0], [0], [1], [0, 0, 1, 1], [], []>} : vector<8x32xbf16>, vector<32x32xbf16>, vector<8x32xf32> -> vector<8x32xf32>
    %24 = arith.addf %23, %22 : vector<8x32xf32>
    %25 = vector.broadcast %19 : vector<1x32xf32> to vector<8x32xf32>
    %26 = arith.addf %24, %25 : vector<8x32xf32>
    %cst_22 = arith.constant 0.000000e+00 : f32
    %27 = vector.broadcast %cst_22 : f32 to vector<8x32xf32>
    %28 = arith.maximumf %26, %27 : vector<8x32xf32>
    %c0_23 = arith.constant 0 : index
    %c0_24 = arith.constant 0 : index
    %c0_25 = arith.constant 0 : index
    %29 = vector.load %arg9[%c0_23, %c0_24, %c0_25] : memref<1x8x48xf32, #tpu.memory_space<vmem>>, vector<1x8x32xf32>
    %30 = vector.shape_cast %29 : vector<1x8x32xf32> to vector<8x32xf32>
    %31 = vector.shape_cast %28 : vector<8x32xf32> to vector<1x8x32xf32>
    tpu.vector_store %arg9[%c0_23, %c0_24, %c0_25], %31 {strides = array<i32>} : memref<1x8x48xf32, #tpu.memory_space<vmem>>, vector<1x8x32xf32>,
    %c0_26 = arith.constant 0 : index
    %c0_27 = arith.constant 0 : index
    %c32 = arith.constant 32 : index
    %32 = vector.load %arg9[%c0_26, %c0_27, %c32] : memref<1x8x48xf32, #tpu.memory_space<vmem>>, vector<1x8x16xf32>
    %33 = vector.shape_cast %32 : vector<1x8x16xf32> to vector<8x16xf32>
    %34 = vector.shape_cast %1 : vector<8x16xf32> to vector<1x8x16xf32>
    tpu.vector_store %arg9[%c0_26, %c0_27, %c32], %34 {strides = array<i32>} : memref<1x8x48xf32, #tpu.memory_space<vmem>>, vector<1x8x16xf32>,
    return
  }
  func.func @transform_0(%arg0: i32) -> (i32, i32, i32) {
    %c0_i32 = arith.constant 0 : i32
    %c0_i32_0 = arith.constant 0 : i32
    %c0_i32_1 = arith.constant 0 : i32
    return %arg0, %c0_i32, %c0_i32_0 : i32, i32, i32
  }
  func.func @transform_1(%arg0: i32) -> (i32, i32) {
    %c0_i32 = arith.constant 0 : i32
    %c0_i32_0 = arith.constant 0 : i32
    %c0_i32_1 = arith.constant 0 : i32
    return %c0_i32, %c0_i32_0 : i32, i32
  }
  func.func @transform_2(%arg0: i32) -> (i32, i32) {
    %c0_i32 = arith.constant 0 : i32
    %c0_i32_0 = arith.constant 0 : i32
    %c0_i32_1 = arith.constant 0 : i32
    return %c0_i32, %c0_i32_0 : i32, i32
  }
  func.func @transform_3(%arg0: i32) -> (i32, i32) {
    %c0_i32 = arith.constant 0 : i32
    %c0_i32_0 = arith.constant 0 : i32
    %c0_i32_1 = arith.constant 0 : i32
    return %c0_i32, %c0_i32_0 : i32, i32
  }
  func.func @transform_4(%arg0: i32) -> (i32, i32) {
    %c0_i32 = arith.constant 0 : i32
    %c0_i32_0 = arith.constant 0 : i32
    %c0_i32_1 = arith.constant 0 : i32
    return %c0_i32, %c0_i32_0 : i32, i32
  }
  func.func @transform_5(%arg0: i32) -> (i32, i32) {
    %c0_i32 = arith.constant 0 : i32
    %c0_i32_0 = arith.constant 0 : i32
    %c0_i32_1 = arith.constant 0 : i32
    return %c0_i32, %c0_i32_0 : i32, i32
  }
  func.func @transform_6(%arg0: i32) -> (i32, i32) {
    %c0_i32 = arith.constant 0 : i32
    %c0_i32_0 = arith.constant 0 : i32
    %c0_i32_1 = arith.constant 0 : i32
    return %c0_i32, %c0_i32_0 : i32, i32
  }
  func.func @transform_7(%arg0: i32) -> (i32, i32) {
    %c0_i32 = arith.constant 0 : i32
    %c0_i32_0 = arith.constant 0 : i32
    %c0_i32_1 = arith.constant 0 : i32
    return %c0_i32, %c0_i32_0 : i32, i32
  }
  func.func @transform_8(%arg0: i32) -> (i32, i32, i32) {
    %c0_i32 = arith.constant 0 : i32
    %c0_i32_0 = arith.constant 0 : i32
    %c0_i32_1 = arith.constant 0 : i32
    return %arg0, %c0_i32, %c0_i32_0 : i32, i32, i32
  }
}

</mosaic_0001>

<bundles_post_ra>
// kernel: tpu_custom_call.1
= control target key start
LH: loop header
LB: loop body
LE: loop exit
PB: predicated region body
PF: predicated region fallthrough
CT: control target
= control target key end

     0   :  { %s1613_s0 = inlined_call_operand.hbm [shape: f32[2,8,16], index: 0, kind: input, shape index: {}]   ;;  %s1614_s1 = inlined_call_operand.hbm [shape: bf16[8,8], index: 1, kind: input, shape index: {}]   ;;  %s1615_s2 = inlined_call_operand.hbm [shape: bf16[16,32], index: 2, kind: input, shape index: {}]   ;;  %s1616_s3 = inlined_call_operand.hbm [shape: bf16[16,32], index: 3, kind: input, shape index: {}]   ;;  %s1617_s4 = inlined_call_operand.vmem [shape: f32[1,32], index: 4, kind: input, shape index: {}]   ;;  %s1618_s5 = inlined_call_operand.vmem [shape: bf16[32,32], index: 5, kind: input, shape index: {}]   ;;  %s1619_s6 = inlined_call_operand.hbm [shape: bf16[32,32], index: 6, kind: input, shape index: {}]   ;;  %s1620_s7 = inlined_call_operand.vmem [shape: f32[1,32], index: 7, kind: input, shape index: {}]   ;;  %s1621_s8 = inlined_call_operand.hbm [shape: f32[2,8,48], index: 8, kind: output, shape index: {}]  }
   0x1   :  { %1625 = sst [smem:[#allocation16_spill]] %s1614_s1 }
   0x2   :  { %13 = vsyncpa [#allocation3], 0 }
   0x3   :  { %15 = vsyncpa [#allocation3 + $0x1], 0 }
   0x4   :  { %16 = vsyncpa [#allocation6], 0 }
   0x5   :  { %17 = vsyncpa [#allocation9], 0 }
   0x6   :  { %18 = vsyncpa [#allocation4], 0 }
   0x7   :  { %20 = vsyncpa [#allocation4 + $0x1], 0  ;;  %s1302_s27 = smov 0   ;;  %s1304_s28 = smov 0  }
   0x8   :  { %s1306_s29 = smov 0   ;;  %s1308_s30 = smov 0  }
   0x9 LB: > { %s1246_s9 = smov [#allocation5]   ;;  %s1323_s11 = sadd.s32 4294967295, %s1244_s30   ;;  %s1244_s30 = sphi %s1308_s30, %s1647_s30   ;;  %s1240_s29 = sphi %s1306_s29, %s1646_s29   ;;  %s1236_s28 = sphi %s1304_s28, %s1645_s28   ;;  %s1232_s27 = sphi %s1302_s27, %s1644_s27  }
   0xa   : > { %s243_s10 = sshll.u32 %s1246_s9, 4  ;;  %p843_p0 = scmp.ge.s32.totalorder %s1244_s30, 1  ;;  %s244_s10 = int_to_ptr.vmem [resolvable:$true] %s243_s10 }
   0xb   : > { %p1622_p1 = scmp.eq.s32.totalorder %s1323_s11, 0  ;;  %p230_p2 = scmp.lt.s32.totalorder %s1244_s30, 3 }
   0xc   : > { %s1247_s13 = smov [#allocation8]   ;;  %s1248_s16 = smov [#allocation7]  }
   0xd   : > { %p1328_p3 = pnand %p843_p0, %p230_p2  ;;  %s266_s14 = sshll.u32 %s1247_s13, 4  ;;  %s1341_s14 = int_to_ptr.vmem [resolvable:$true] %s266_s14 }
   0xe   : > { %s253_s17 = sshll.u32 %s1248_s16, 4  ;;  %s1628_s1 = sld [smem:[#allocation16_spill]]  ;;  %s1343_s17 = int_to_ptr.vmem [resolvable:$true] %s253_s17 }
   0xf   : > { %s1626_s12 = scalar_select %p1328_p3, 1, 0 }
  0x10   : > { %p950_p5 = pneg %p1328_p3 }
  0x12   : > { %p1337_p6 = pnand %p950_p5, %p1622_p1 }
  0x14   : > { %s1028_s20 = scalar_lea.hbm %s1628_s1, 64  ;;  %p1353_p8 = pneg %p1337_p6 }
  0x15   : > { %p1029_p7 = scmp.ne.s32.totalorder %s1628_s1, %s1028_s20  ;;  %p1035_p11 = scmp.lt.u32.totalorder %s1028_s20, %s1628_s1 }
  0x17   : > { %p1031_p9 = pnand %p1353_p8, %p1029_p7 }
  0x19   : > { %p1032_p10 = pneg %p1031_p9 }
  0x1b   : > { %p1037_p12 = pnand %p1035_p11, %p1032_p10 }
  0x1d   : > { %1040 = shalt.err (!%p1037_p12)
}
  0x1e   : > { %s1041_s26 = scalar_lea.vmem %s244_s10, 64  ;;  %p1049_p5 = scmp.lt.s32.totalorder %s244_s10, %s244_s10 }
  0x1f   : > { %p1042_p13 = scmp.ne.s32.totalorder %s244_s10, %s1041_s26  ;;  %p1050_p4 = scmp.lt.s32.totalorder %s1041_s26, %s1041_s26 }
  0x21   : > { %p1044_p0 = pnand %p1042_p13, %p1353_p8  ;;  %p1051_p1 = por %p1050_p4, %p1049_p5 }
  0x23   : > { %p1045_p2 = pneg %p1044_p0 }
  0x25   : > { %p1052_p3 = pnand %p1051_p1, %p1045_p2 }
  0x27   : > { %1055 = shalt.err (!%p1052_p3)
}
  0x28   : > { %953 = dma.hbm_to_vmem [thread:$0]  (!%p1337_p6), %s1628_s1, 64, %s244_s10, [#allocation6]  }
  0x29   : > { %s1056_s19 = scalar_lea.hbm %s1616_s3, 128 }
  0x2a   : > { %p1057_p7 = scmp.ne.s32.totalorder %s1616_s3, %s1056_s19  ;;  %p1063_p1 = scmp.lt.u32.totalorder %s1056_s19, %s1616_s3 }
  0x2c   : > { %p1059_p9 = pnand %p1057_p7, %p1353_p8 }
  0x2e   : > { %p1060_p4 = pneg %p1059_p9 }
  0x30   : > { %p1065_p3 = pnand %p1063_p1, %p1060_p4 }
  0x32   : > { %1068 = shalt.err (!%p1065_p3)
}
  0x33   : > { %s1069_s10 = scalar_lea.vmem %s1341_s14, 128  ;;  %p1077_p13 = scmp.lt.s32.totalorder %s1341_s14, %s1341_s14 }
  0x34   : > { %p1070_p10 = scmp.ne.s32.totalorder %s1341_s14, %s1069_s10  ;;  %p1078_p0 = scmp.lt.s32.totalorder %s1069_s10, %s1069_s10 }
  0x36   : > { %p1072_p11 = pnand %p1070_p10, %p1353_p8  ;;  %p1079_p2 = por %p1078_p0, %p1077_p13 }
  0x38   : > { %p1073_p12 = pneg %p1072_p11 }
  0x3a   : > { %p1080_p5 = pnand %p1079_p2, %p1073_p12 }
  0x3c   : > { %1083 = shalt.err (!%p1080_p5)
}
  0x3d   : > { %s1249_s25 = smov 64   ;;  %s1250_s26 = smov 4  }
  0x3e   : > { %959 = dma.hbm_to_vmem [thread:$0]  (!%p1337_p6), %s1616_s3, 128, %s1341_s14, [#allocation9], %s1249_s25, %s1249_s25, %s1250_s26  }
  0x3f   : > { %s1084_s19 = scalar_lea.hbm %s1615_s2, 128 }
  0x40   : > { %p1085_p7 = scmp.ne.s32.totalorder %s1615_s2, %s1084_s19  ;;  %p1091_p1 = scmp.lt.u32.totalorder %s1084_s19, %s1615_s2 }
  0x42   : > { %p1087_p9 = pnand %p1085_p7, %p1353_p8 }
  0x44   : > { %p1088_p4 = pneg %p1087_p9 }
  0x46   : > { %p1093_p3 = pnand %p1091_p1, %p1088_p4 }
  0x48   : > { %1096 = shalt.err (!%p1093_p3)
}
  0x49   : > { %s1097_s14 = scalar_lea.vmem %s1343_s17, 128  ;;  %p1105_p13 = scmp.lt.s32.totalorder %s1343_s17, %s1343_s17 }
  0x4a   : > { %p1098_p10 = scmp.ne.s32.totalorder %s1343_s17, %s1097_s14  ;;  %p1106_p0 = scmp.lt.s32.totalorder %s1097_s14, %s1097_s14 }
  0x4c   : > { %p1100_p11 = pnand %p1098_p10, %p1353_p8  ;;  %p1107_p2 = por %p1106_p0, %p1105_p13 }
  0x4e   : > { %p1101_p12 = pneg %p1100_p11 }
  0x50   : > { %p1108_p5 = pnand %p1107_p2, %p1101_p12 }
  0x52   : > { %1111 = shalt.err (!%p1108_p5)
}
  0x53   : > { %956 = dma.hbm_to_vmem [thread:$0]  (!%p1337_p6), %s1615_s2, 128, %s1343_s17, [#allocation6], %s1249_s25, %s1249_s25, %s1250_s26  }
  0x54   : > { %s1251_s13 = smov [#allocation10]   ;;  %s1112_s20 = scalar_lea.hbm %s1619_s6, 256 }
  0x55   : > { %s285_s16 = sshll.u32 %s1251_s13, 4  ;;  %p1113_p7 = scmp.ne.s32.totalorder %s1619_s6, %s1112_s20  ;;  %s286_s16 = int_to_ptr.vmem [resolvable:$true] %s285_s16 }
  0x56   : > { %p1119_p1 = scmp.lt.u32.totalorder %s1112_s20, %s1619_s6 }
  0x57   : > { %p1115_p9 = pnand %p1113_p7, %p1353_p8 }
  0x59   : > { %p1116_p4 = pneg %p1115_p9 }
  0x5b   : > { %p1121_p3 = pnand %p1119_p1, %p1116_p4 }
  0x5d   : > { %1124 = shalt.err (!%p1121_p3)
}
  0x5e   : > { %s1125_s17 = scalar_lea.vmem %s286_s16, 256  ;;  %p1133_p13 = scmp.lt.s32.totalorder %s286_s16, %s286_s16 }
  0x5f   : > { %p1126_p10 = scmp.ne.s32.totalorder %s286_s16, %s1125_s17  ;;  %p1134_p0 = scmp.lt.s32.totalorder %s1125_s17, %s1125_s17 }
  0x61   : > { %p1128_p11 = pnand %p1126_p10, %p1353_p8  ;;  %p1135_p2 = por %p1134_p0, %p1133_p13 }
  0x63   : > { %p1129_p12 = pneg %p1128_p11 }
  0x65   : > { %p1136_p5 = pnand %p1135_p2, %p1129_p12 }
  0x67   : > { %1139 = shalt.err (!%p1136_p5)
}
  0x68   : > { %962 = dma.hbm_to_vmem [thread:$0]  (!%p1337_p6), %s1619_s6, 256, %s286_s16, [#allocation9], %s1249_s25, %s1249_s25, %s1250_s26  }
  0x69   : > { %s842_s15 = sadd.s32 4294967294, %s1244_s30   ;;  %s1444_s23 = sadd.s32 1, %s1244_s30  }
  0x6a   : > { %s30_s13 = ssub.s32 %s1244_s30, %s1444_s23  ;;  %s33_s18 = sadd.s32 1, %s1240_s29 }
  0x6b   : > { %p31_p8 = scmp.eq.s32.totalorder %s30_s13, 0  ;;  %p40_p7 = scmp.ne.s32.totalorder %s1240_s29, %s1236_s28 }
  0x6c   : > { %p41_p9 = scmp.eq.s32.totalorder %s1244_s30, 0  ;;  %p46_p4 = scmp.ne.s32.totalorder %s1236_s28, %s1232_s27 }
  0x6d   : > { %s1455_s19 = scalar_select %p31_p8, %s1240_s29, %s33_s18  }
  0x6e   : > { %p1457_p1 = por %p41_p9, %p40_p7  ;;  %p1631_p3 = scmp.eq.s32.totalorder %s1323_s11, 0 }
  0x6f   : > { %p217_p10 = scmp.eq.s32.totalorder %s1323_s11, 1  ;;  %p223_p11 = scmp.eq.s32.totalorder %s842_s15, 1 }
  0x70   : > { %p1463_p6 = por %p1631_p3, %p46_p4  ;;  %p975_p12 = scmp.lt.s32.totalorder %s1244_s30, 2 }
  0x71   : > { %s302_s26 = sand.u32 1, %s1240_s29   ;;  %p1470_p13 = por %p217_p10, %p40_p7 }
  0x72   : > { %p1474_p0 = por %p223_p11, %p46_p4  ;;  %s849_s22 = sshll.u32 %s302_s26, 3 }
  0x73   : > { %s1633_s16 = scalar_select %p1470_p13, 1, 0 }
  0x74   : > { %s1634_s21 = scalar_select %p1474_p0, 1, 0 }
  0x75   : > { %s850_s24 = sshll.u32 %s1244_s30, 7  ;;  %s306_s9 = scalar_lea.vmem [#allocation2], %s849_s22 }
  0x76   : > { %s1482_s10 = scalar_lea.hbm %s1613_s0, %s850_s24  ;;  %s313_s15 = sshll.u32 %s306_s9, 4  ;;  %s1484_s15 = int_to_ptr.vmem [resolvable:$true] %s313_s15 }
  0x77   : > { %p1488_p2 = pnand %p975_p12, %p1457_p1  ;;  %s303_s18 = scalar_lea.sflag [#allocation3], %s302_s26 }
  0x78   : > { %s1140_s1 = scalar_lea.hbm %s1482_s10, 128  ;;  %s1145_s14 = scalar_lea.hbm %s1613_s0, 256 }
  0x79   : > { %p1141_p5 = scmp.ne.s32.totalorder %s1482_s10, %s1140_s1  ;;  %p1142_p8 = pneg %p1488_p2 }
  0x7a   : > { %p1146_p4 = scmp.lt.u32.totalorder %s1482_s10, %s1613_s0  ;;  %p1147_p1 = scmp.lt.u32.totalorder %s1145_s14, %s1140_s1 }
  0x7b   : > { %p1143_p7 = pnand %p1142_p8, %p1141_p5  ;;  %p1149_p10 = scmp.lt.u32.totalorder %s1140_s1, %s1482_s10 }
  0x7c   : > { %p1148_p3 = por %p1147_p1, %p1146_p4 }
  0x7d   : > { %p1144_p9 = pneg %p1143_p7 }
  0x7e   : > { %p1150_p11 = por %p1149_p10, %p1148_p3 }
  0x80   : > { %p1151_p12 = pnand %p1150_p11, %p1144_p9 }
  0x82   : > { %1154 = shalt.err (!%p1151_p12)
}
  0x83   : > { %s1155_s26 = scalar_lea.vmem %s1484_s15, 128  ;;  %s1252_s9 = smov [#allocation2]  }
  0x84   : > { %p1156_p5 = scmp.ne.s32.totalorder %s1484_s15, %s1155_s26  ;;  %s1160_s22 = sshll.u32 %s1252_s9, 4  ;;  %s1161_s22 = int_to_ptr.vmem [resolvable:$false] %s1160_s22 }
  0x85   : > { %s1162_s24 = scalar_lea.vmem %s1161_s22, 256  ;;  %p1163_p13 = scmp.lt.s32.totalorder %s1484_s15, %s1161_s22 }
  0x86   : > { %p1158_p7 = pnand %p1156_p5, %p1142_p8  ;;  %p1164_p4 = scmp.lt.s32.totalorder %s1162_s24, %s1155_s26 }
  0x88   : > { %p1159_p0 = pneg %p1158_p7  ;;  %p1165_p1 = por %p1164_p4, %p1163_p13 }
  0x8a   : > { %p1166_p3 = pnand %p1165_p1, %p1159_p0 }
  0x8c   : > { %1169 = shalt.err (!%p1166_p3)
}
  0x8d   : > { %966 = dma.hbm_to_vmem [thread:$0]  (!%p1488_p2), %s1482_s10, 128, %s1484_s15, %s303_s18  }
  0x8e   : > { %p1636_p9 = scmp.ne.s32.totalorder %s1626_s12, 0 }
  0x8f   : > { %s1520_s1 = sand.u32 (!%p1636_p9), 1, %s1236_s28  }
  0x90   : > { %322 = sbr.rel (%p1636_p9) target bundleno = 1051 (0x41b), region = 52  ;;  %s852_s14 = sshll.u32 (!%p1636_p9), %s1520_s1, 3 }
  0x91   : > { %s325_s20 = scalar_lea.sflag (!%p1636_p9), [#allocation3], %s1520_s1  ;;  %s328_s17 = scalar_lea.vmem (!%p1636_p9), [#allocation2], %s852_s14 }
  0x97   : > { %1215 = dma.done.wait (%p1463_p6), %s325_s20, 128  }
  0x98   : > { %1217 = vsyncadd (%p1463_p6), %s325_s20, 4294967168  ;;  %p1637_p13 = scmp.eq.s32.totalorder %s1323_s11, 0 }
  0x9a   : > { %1219 = dma.done.wait (%p1637_p13), [#allocation6], 192   ;;  %p1638_p0 = pmov %p1637_p13 }
  0x9c   : > { %1221 = vsyncadd (%p1638_p0), [#allocation6], 4294967104  ;;  %p1639_p2 = pmov %p1638_p0 }
  0x9d   : > { %p1640_p8 = pmov %p1638_p0 }
  0x9e   : > { %1223 = dma.done.wait (%p1639_p2), [#allocation9], 384  }
  0x9f   : > { %1225 = vsyncadd (%p1640_p8), [#allocation9], 4294966912  ;;  %v1253_v0 = vmov 0.0   ;;  %vm1254_vm0 = vmmov 0   ;;  %v378_v1 = vld [vmem:[%s328_s17] sm:$0xff]  ;;  %vm390_vm1 = vcmask 1043456  }
  0xa0   : > { %890 = vmatprep.subr.bf16.mxu0 %v1253_v0  ;;  %892 = vmatprep.mubr.msk.bf16.mxu0 %vm1254_vm0, %v1253_v0  ;;  %v380_v2 = vpack.c.bf16 %v378_v1, %v378_v1  ;;  %vm386_vm2 = vcmask 64512   ;;  %v379_v3 = vld [vmem:[#allocation5] sm:$0xf]  ;;  %v1022_v5 = vld [vmem:[#allocation7] sm:$0xff]   ;;  %v1023_v6 = vld [vmem:[#allocation8] sm:$0xff]   ;;  %vm441_vm3 = vcmask 130048  }
  0xa1   : > { %896 = vmatprep.subr.bf16.mxu1 %v1253_v0  ;;  %898 = vmatprep.mubr.msk.bf16.mxu1 %vm1254_vm0, %v1253_v0  ;;  %v1026_v16 = vld [vmem:[#allocation10] sm:$0xff]   ;;  %v863_v17 = vld [vmem:[%s1617_s4] ss:$0 sm:$0xff]  ;;  %vm607_vm4 = vcmask 261120   ;;  %v1027_v29 = vld [vmem:[#allocation10 + $0x8] sm:$0xff]   ;;  %s1255_s26 = smov 32  }
  0xa2   : > { %v392_v4 = vsel %vm390_vm1, %v380_v2, 0  ;;  %897 = vmatpush3.bf16.msra.mxu1 %v1023_v6  ;;  %v1024_v27 = vld [vmem:[%s1618_s5] sm:$0xff]   ;;  %v1025_v28 = vld [vmem:[%s1618_s5 + $0x8] sm:$0xff]   ;;  %715 = vrot.lane.b32.xlu0 %v378_v1, %s1255_s26  ;;  %s873_s24 = sshll.u32 %s1323_s11, 7  ;;  %s376_s20 = scalar_lea.vmem [#allocation11], %s852_s14  ;;  %vm718_vm5 = vcmask 392448  }
  0xa3   : > { %891 = vmatpush3.bf16.msra.mxu0 %v392_v4  ;;  %908 = vmatprep.subr.bf16.mxu1 %v1253_v0  ;;  %v871_v39 = vld [vmem:[%s1620_s7] ss:$0 sm:$0xff]  ;;  %s734_s17 = sshll.u32 %s376_s20, 4  ;;  %s1568_s10 = scalar_lea.hbm %s1621_s8, %s873_s24  ;;  %s1570_s17 = int_to_ptr.vmem [resolvable:$true] %s734_s17 }
  0xa4   : > { %902 = vmatprep.subr.bf16.mxu0 %v1253_v0  ;;  %s721_s11 = scalar_lea.sflag [#allocation4], %s1520_s1  ;;  %s1170_s15 = scalar_lea.vmem %s1570_s17, 128 }
  0xa5   : > { %p1171_p6 = scmp.ne.s32.totalorder %s1570_s17, %s1170_s15  ;;  %p1641_p10 = scmp.ne.s32.totalorder %s1633_s16, 0 }
  0xa6   : > { %893 = vmatmul.mubr.msk.bf16.vlgmr.msra.gmra.mrb[0].mxu0 %vm386_vm2, %v379_v3  ;;  %s1256_s14 = smov [#allocation11]  }
  0xa7   : > { %903 = vmatpush3.bf16.msra.mxu0 %v1022_v5  ;;  %904 = vmatprep.mubr.msk.bf16.mxu0 %vm1254_vm0, %v1253_v0  ;;  %p1172_p11 = pnand %p1171_p6, %p1641_p10  ;;  %s1174_s13 = sshll.u32 %s1256_s14, 4  ;;  %s1175_s13 = int_to_ptr.vmem [resolvable:$false] %s1174_s13 }
  0xa8   : > { %914 = vmatprep.subr.bf16.mxu0 %v1253_v0  ;;  %s1176_s18 = scalar_lea.vmem %s1175_s13, 256  ;;  %p1177_p5 = scmp.lt.s32.totalorder %s1570_s17, %s1175_s13 }
  0xa9   : > { %p1173_p12 = pneg %p1172_p11  ;;  %p1178_p7 = scmp.lt.s32.totalorder %s1176_s18, %s1170_s15 }
  0xab   : > { %p1179_p4 = por %p1178_p7, %p1177_p5 }
  0xad   : > { %p1180_p1 = pnand %p1179_p4, %p1173_p12 }
  0xae   : > { %905 = vmatmul.mubr.msk.bf16.vlgmr.msra.gmra.mrb[4].mxu0 %vm441_vm3, %v380_v2 }
  0xaf   : > { %918 = vmatprep.mubr.msk.bf16.mxu0 %vm1254_vm0, %v1253_v0  ;;  %915 = vmatpush3.bf16.msra.mxu0 %v1026_v16 }
  0xb0   : > { %916 = vmatprep.subr.bf16.mxu0 %v1253_v0 }
  0xb3   : > { %917 = vmatpush3.bf16.msra.mxu0 %v1027_v29 }
 0x114   : > { %v716_v47 = vpop.permute.xlu0 %715 }
 0x179   : > { %v428_v7 = vpop.f32.mrb[0].mxu0 }
 0x17a   : > { %v434_v8 = vpack.c.bf16 %v428_v7, %v428_v7  ;;  %v894_v9 = vpop.f32.mrb[1].mxu0 }
 0x17b   : > { %v431_v10 = vpop.f32.mrb[2].mxu0 }
 0x17c   : > { %v895_v11 = vpop.f32.mrb[3].mxu0  ;;  %899 = vmatmul.mubr.msk.bf16.vlgmr.msra.gmra.mrb[0].mxu1 %vm441_vm3, %v434_v8 }
 0x17d   : > { %910 = vmatprep.mubr.msk.bf16.mxu1 %vm1254_vm0, %v1253_v0 }
 0x181   : > { %v527_v12 = vpop.f32.mrb[4].mxu0 }
 0x182   : > { %v906_v13 = vpop.f32.mrb[5].mxu0 }
 0x183   : > { %v530_v14 = vpop.f32.mrb[6].mxu0 }
 0x184   : > { %v907_v15 = vpop.f32.mrb[7].mxu0 }
 0x24f   : > { %v479_v18 = vpop.f32.mrb[0].mxu1 }
 0x250   : > { %v528_v19 = vadd.f32 %v527_v12, %v479_v18  ;;  %v900_v20 = vpop.f32.mrb[1].mxu1 }
 0x251   : > { %v482_v21 = vpop.f32.mrb[2].mxu1 }
 0x252   : > { %v539_v22 = vadd.f32 %v863_v17, %v528_v19  ;;  %v901_v23 = vpop.f32.mrb[3].mxu1 }
 0x254   : > { %v540_v24 = vmax.f32 %v539_v22, 0.0 }
 0x256   : > { %v541_v25 = vpack.c.bf16 %v540_v24, %v540_v24 }
 0x258   : > { %v552_v26 = vsel %vm390_vm1, %v541_v25, 0 }
 0x259   : > { %909 = vmatpush3.bf16.msra.mxu1 %v552_v26 }
 0x25a   : > { %922 = vmatprep.subr.bf16.mxu1 %v1253_v0 }
 0x25c   : > { %911 = vmatmul.mubr.msk.bf16.vlgmr.msra.gmra.mrb[4].mxu1 %vm386_vm2, %v379_v3 }
 0x25d   : > { %923 = vmatpush3.bf16.msra.mxu1 %v1024_v27  ;;  %926 = vmatprep.mubr.msk.bf16.mxu1 %vm1254_vm0, %v1253_v0 }
 0x25e   : > { %924 = vmatprep.subr.bf16.mxu1 %v1253_v0 }
 0x261   : > { %925 = vmatpush3.bf16.msra.mxu1 %v1025_v28 }
 0x264   : > { %927 = vmatmul.mubr.msk.bf16.vlgmr.msra.gmra.mrb[8].mxu1 %vm607_vm4, %v541_v25 }
 0x32f   : > { %v588_v30 = vpop.f32.mrb[4].mxu1 }
 0x330   : > { %v594_v31 = vpack.c.bf16 %v588_v30, %v588_v30  ;;  %v912_v32 = vpop.f32.mrb[5].mxu1 }
 0x331   : > { %v591_v33 = vpop.f32.mrb[6].mxu1 }
 0x332   : > { %919 = vmatmul.mubr.msk.bf16.vlgmr.msra.gmra.mrb[8].mxu0 %vm607_vm4, %v594_v31  ;;  %v913_v34 = vpop.f32.mrb[7].mxu1 }
 0x337   : > { %v699_v35 = vpop.f32.mrb[8].mxu1 }
 0x338   : > { %v928_v36 = vpop.f32.mrb[9].mxu1 }
 0x339   : > { %v702_v37 = vpop.f32.mrb[10].mxu1 }
 0x33a   : > { %v929_v38 = vpop.f32.mrb[11].mxu1 }
 0x405   : > { %v645_v40 = vpop.f32.mrb[8].mxu0 }
 0x406   : > { %v700_v41 = vadd.f32 %v699_v35, %v645_v40  ;;  %v920_v42 = vpop.f32.mrb[9].mxu0 }
 0x407   : > { %v648_v43 = vpop.f32.mrb[10].mxu0 }
 0x408   : > { %v711_v44 = vadd.f32 %v871_v39, %v700_v41  ;;  %v921_v45 = vpop.f32.mrb[11].mxu0 }
 0x40a   : > { %v712_v46 = vmax.f32 %v711_v44, 0.0 }
 0x40c   : > { %713 = vst.msk [vmem:[%s376_s20] sm:$0xff] %vm607_vm4, %v712_v46 }
 0x40d   : > { %719 = vst.msk [vmem:[%s376_s20] sm:$0xff] %vm718_vm5, %v716_v47 }
 0x40e   : > { %1183 = shalt.err (!%p1180_p1)
}
 0x40f   : > { %s1184_s1 = scalar_lea.hbm %s1568_s10, 128  ;;  %s1188_s22 = scalar_lea.hbm %s1621_s8, 256 }
 0x410   : > { %p1185_p3 = scmp.ne.s32.totalorder %s1568_s10, %s1184_s1  ;;  %p1189_p0 = scmp.lt.u32.totalorder %s1568_s10, %s1621_s8 }
 0x411   : > { %p1190_p2 = scmp.lt.u32.totalorder %s1188_s22, %s1184_s1  ;;  %p1192_p6 = scmp.lt.u32.totalorder %s1184_s1, %s1568_s10 }
 0x412   : > { %p1186_p9 = pnand %p1185_p3, %p1641_p10 }
 0x413   : > { %p1191_p8 = por %p1190_p2, %p1189_p0 }
 0x414   : > { %p1187_p13 = pneg %p1186_p9 }
 0x415   : > { %p1193_p11 = por %p1192_p6, %p1191_p8 }
 0x417   : > { %p1194_p12 = pnand %p1193_p11, %p1187_p13 }
 0x419   : > { %1197 = shalt.err (!%p1194_p12)
}
 0x41a   : > { %948 = dma.vmem_to_hbm [thread:$0]  (%p1641_p10), %s1570_s17, 128, %s1568_s10, %s721_s11  }
 0x41b PF: > { %s746_s12 = sand.u32 1, %s1232_s27   ;;  %p1642_p5 = scmp.ne.s32.totalorder %s1634_s21, 0 }
 0x41c   : > { %p1643_p7 = scmp.ge.s32.totalorder %s1244_s30, 2  ;;  %s747_s25 = scalar_lea.sflag [#allocation4], %s746_s12 }
 0x41e   : > { %p968_p4 = pnand %p1643_p7, %p1642_p5 }
 0x420   : > { %1227 = dma.done.wait (!%p968_p4), %s747_s25, 128  }
 0x421   : > { %1229 = vsyncadd (!%p968_p4), %s747_s25, 4294967168  ;;  %p23_p1 = scmp.ge.s32.totalorder %s1444_s23, 4   ;;  %s1644_s27 = smov %s1236_s28 }
 0x422   : > { %s1645_s28 = smov %s1240_s29  ;;  %s1646_s29 = smov %s1455_s19 }
 0x423   : > { %s1647_s30 = smov %s1444_s23  ;;  %25 = sbr.rel (!%p23_p1) target bundleno = 9 (0x9), region = 113 }
 0x42a   :  { %752 = vsyncpa [#allocation3], 1 }
 0x42b   :  { %754 = vsyncpa [#allocation3 + $0x1], 1 }
 0x42c   :  { %755 = vsyncpa [#allocation6], 1 }
 0x42d   :  { %756 = vsyncpa [#allocation9], 1 }
 0x42e   :  { %757 = vsyncpa [#allocation4], 1 }
 0x42f   :  { %759 = vsyncpa [#allocation4 + $0x1], 1 }

</bundles_post_ra>
